<compile_context>
chip_gen: v6e
topology: v6e:2x2x1
jax: 0.10.0
libtpu: 0.0.40
codegen_flags: <defaults>
</compile_context>

<pallas_src>
import functools

import jax
import jax.numpy as jnp
from jax.experimental import pallas as pl
from jax.experimental.pallas import tpu as pltpu


# --------------------------- Tiling / VMEM budget ----------------------------

@functools.lru_cache(maxsize=None)
def _vmem_limit_bytes():
    """~75% of physical VMEM (48 MiB on v7x, 96 MiB on v5e/v6e), capped."""
    cap = 64 * 1024 * 1024
    try:
        info = pltpu.get_tpu_info()
        cap = int(
            getattr(info, "vmem_capacity_bytes", None)
            or getattr(info, "vmem_size_bytes", None)
            or cap)
    except Exception:
        pass
    return min((cap * 3) // 4, 100 * 1024 * 1024)


def _select_tiles(B, S, H, C_pad, hidden_itemsize, tb, ts):
    """Pick (TB, TS) that fit the VMEM budget with double buffering."""
    vmem_limit = _vmem_limit_bytes()
    budget = int(vmem_limit * 0.85)

    # Batch tile: full B if it fits, else a multiple of 8; keep >= 2 batch
    # tiles so the "parallel" axis can shard across the 2 TensorCores on v7x.
    if B <= tb:
        TB = B
    else:
        TB = max(8, (min(tb, B) // 8) * 8)
        half = (((B + 1) // 2 + 7) // 8) * 8
        TB = min(TB, max(8, half))

    # Sequence tile: full S if it fits, else a multiple of 128 (lane dim of
    # the mask block, sublane-packing-safe for the bf16 hidden block).
    if S <= ts:
        TS = S
    else:
        TS = max(128, (min(ts, S) // 128) * 128)

    def bytes_needed(tb_, ts_):
        hid = 2 * tb_ * ts_ * H * hidden_itemsize      # double-buffered hidden
        msk = 2 * tb_ * ts_ * 4                        # double-buffered mask
        wgt = 2 * (H * C_pad * 2 + C_pad * 4)          # bf16 W + f32 bias
        out = 2 * tb_ * C_pad * 4
        scr = tb_ * H * 4 + tb_ * 4                    # f32 accumulators
        return hid + msk + wgt + out + scr

    while bytes_needed(TB, TS) > budget and TS > 128:
        TS = max(128, ((TS // 2 + 127) // 128) * 128)
    while bytes_needed(TB, TS) > budget and TB > 8 and TB % 8 == 0:
        TB = max(8, TB - 8)

    return TB, TS, vmem_limit


# ----------------------------- Pallas kernel --------------------------------

def goodreads_head_kernel(n_s_tiles_ref,      # SMEM [nb] int32 (scalar prefetch)
                          hidden_ref,         # [TB, TS, H]  bf16
                          mask_ref,           # [TB, TS]     f32
                          w_ref,              # [H, C_pad]   bf16
                          b_ref,              # [1, C_pad]   f32
                          out_ref,            # [TB, C_pad]  f32
                          sum_emb_ref,        # VMEM [TB, H] f32
                          sum_mask_ref):      # VMEM [TB, 1] f32
    b = pl.program_id(0)
    s = pl.program_id(1)

    @pl.when(s == 0)
    def _init():
        sum_emb_ref[...] = jnp.zeros_like(sum_emb_ref)
        sum_mask_ref[...] = jnp.zeros_like(sum_mask_ref)

    # Skip S tiles that are entirely padding for this batch tile.
    @pl.when(s < n_s_tiles_ref[b])
    def _accumulate():
        hidden = hidden_ref[...]                                # [TB, TS, H]
        mask = mask_ref[...]                                    # [TB, TS] f32
        # Mask multiply in the hidden dtype (bf16 on v6e/v7x), accumulate in
        # f32 (exact: mask entries are 0/1).
        masked = hidden * mask.astype(hidden.dtype)[:, :, None]
        sum_emb_ref[...] += jnp.sum(masked, axis=1, dtype=jnp.float32)
        sum_mask_ref[...] += jnp.sum(mask, axis=1, keepdims=True)

    # Epilogue: masked-mean divide, (eval) dropout = identity, Linear.
    # NOTE: never reads hidden_ref/mask_ref -- the last S tile may be a
    # clamped "dead" tile for this batch tile.
    @pl.when(s == pl.num_programs(1) - 1)
    def _finalize():
        denom = jnp.maximum(sum_mask_ref[...], 1e-9)
        mean = sum_emb_ref[...] * pl.reciprocal(denom, approx=True)  # [TB, H]
        out = jnp.dot(mean.astype(w_ref.dtype), w_ref[...],
                      preferred_element_type=jnp.float32) + b_ref[...]
        out_ref[...] = out.astype(out_ref.dtype)


# ------------------------------- Wrapper -------------------------------------

@functools.partial(jax.jit, static_argnames=("tb", "ts"))
def goodreads_head(last_hidden_state, mask, fc_w, fc_b, *, tb=32, ts=512):
    """Fused MeanPooling + Dropout(eval) + Linear head.

    last_hidden_state: [B, S, H] (bf16 or f32)
    mask:              [B, S]    (0/1 attention mask)
    fc_w:              [H, C]    (linear weight, x @ W layout)
    fc_b:              [1, C]    (linear bias)
    returns:           [B, C]    float32
    """
    B, S, H = last_hidden_state.shape
    C = fc_w.shape[1]
    C_pad = pl.cdiv(C, 128) * 128   # lane-dense output store
    itemsize = jnp.dtype(last_hidden_state.dtype).itemsize

    TB, TS, vmem_limit = _select_tiles(B, S, H, C_pad, itemsize, tb, ts)
    nb = pl.cdiv(B, TB)
    ns = pl.cdiv(S, TS)
    B_pad = nb * TB
    S_pad = ns * TS

    hidden = last_hidden_state
    mask_f = mask.astype(jnp.float32)
    if B_pad != B or S_pad != S:
        # Fallback only; callers should pad ids/mask before the backbone so
        # this extra HBM copy of the largest tensor never happens.
        hidden = jnp.pad(hidden, ((0, B_pad - B), (0, S_pad - S), (0, 0)))
        mask_f = jnp.pad(mask_f, ((0, B_pad - B), (0, S_pad - S)))

    # bf16 weight -> native MXU path, half the resident W block.
    w = fc_w.astype(jnp.bfloat16)
    bias = fc_b.astype(jnp.float32)
    if C_pad != C:
        w = jnp.pad(w, ((0, 0), (0, C_pad - C)))
        bias = jnp.pad(bias, ((0, 0), (0, C_pad - C)))

    # Per batch tile: number of leading S tiles containing any valid token.
    tile_has_token = (
        mask_f.reshape(nb, TB, ns, TS).max(axis=(1, 3)) > 0.0)       # [nb, ns]
    s_idx = jnp.arange(1, ns + 1, dtype=jnp.int32)
    n_s_tiles = jnp.max(
        jnp.where(tile_has_token, s_idx[None, :], 0), axis=1
    ).astype(jnp.int32)                                               # [nb]

    def clamp_s(s, nst, b):
        # Dead tiles re-use the last live tile's block index -> unchanged
        # block index -> no fresh DMA for them.
        return jnp.minimum(s, jnp.maximum(nst[b] - 1, 0))

    grid_spec = pltpu.PrefetchScalarGridSpec(
        num_scalar_prefetch=1,
        grid=(nb, ns),
        in_specs=[
            pl.BlockSpec((TB, TS, H),
                         lambda b, s, nst: (b, clamp_s(s, nst, b), 0)),
            pl.BlockSpec((TB, TS),
                         lambda b, s, nst: (b, clamp_s(s, nst, b))),
            pl.BlockSpec((H, C_pad), lambda b, s, nst: (0, 0)),
            pl.BlockSpec((1, C_pad), lambda b, s, nst: (0, 0)),
        ],
        out_specs=pl.BlockSpec((TB, C_pad), lambda b, s, nst: (b, 0)),
        scratch_shapes=[
            pltpu.VMEM((TB, H), jnp.float32),   # sum_embeddings accumulator
            pltpu.VMEM((TB, 1), jnp.float32),   # sum_mask accumulator
        ],
    )

    cost = pl.CostEstimate(
        flops=2 * B_pad * S_pad * H + 2 * B_pad * H * C_pad,
        transcendentals=B_pad,
        bytes_accessed=(B_pad * S_pad * H * itemsize      # hidden read
                        + B_pad * S_pad * 4               # mask read
                        + H * C_pad * 2 + C_pad * 4       # weight + bias
                        + B_pad * C_pad * 4),             # output write
    )

    out_padded = pl.pallas_call(
        goodreads_head_kernel,
        out_shape=jax.ShapeDtypeStruct((B_pad, C_pad), jnp.float32),
        grid_spec=grid_spec,
        compiler_params=pltpu.CompilerParams(
            dimension_semantics=("parallel", "arbitrary"),
            vmem_limit_bytes=vmem_limit),
        cost_estimate=cost,
    )(n_s_tiles, hidden, mask_f, w, bias)

    return out_padded[:B, :C]


# ------------------------------- Model glue ---------------------------------

class GoodreadsModelPallas:
    """JAX/Pallas re-implementation of GoodreadsModel's forward pass."""

    def __init__(self, vocab_size, hidden_size, n_classes, key):
        k_emb, k_w, k_b = jax.random.split(key, 3)
        # TODO(synk): AutoModel transformer backbone is not implemented; a
        # deterministic embedding table stands in for last_hidden_state.
        self.embedding = jax.random.normal(
            k_emb, (vocab_size, hidden_size), dtype=jnp.float32) * 0.02
        # nn.Linear(hidden_size, n_classes): stored pre-transposed to [H, C].
        bound = 1.0 / float(hidden_size) ** 0.5
        self.fc_w = jax.random.uniform(
            k_w, (hidden_size, n_classes), minval=-bound, maxval=bound,
            dtype=jnp.float32)
        self.fc_b = jax.random.uniform(
            k_b, (1, n_classes), minval=-bound, maxval=bound,
            dtype=jnp.float32)

    def __call__(self, ids, mask, *, tb=32, ts=512):
        B, S = ids.shape
        H = self.embedding.shape[1]
        C = self.fc_w.shape[1]
        C_pad = pl.cdiv(C, 128) * 128

        # Pad ids/mask *before* the backbone so the big [B,S,H] activation is
        # emitted already tile-aligned (no wrapper-side jnp.pad of it).
        TB, TS, _ = _select_tiles(B, S, H, C_pad, 2, tb, ts)
        B_pad = pl.cdiv(B, TB) * TB
        S_pad = pl.cdiv(S, TS) * TS
        if B_pad != B or S_pad != S:
            ids = jnp.pad(ids, ((0, B_pad - B), (0, S_pad - S)))
            mask = jnp.pad(mask, ((0, B_pad - B), (0, S_pad - S)))

        # Backbone stand-in (plain JAX glue): embedding lookup -> [B, S, H],
        # kept in bf16 so the memory-bound pooling kernel reads half the bytes.
        last_hidden_state = jnp.take(
            self.embedding, ids, axis=0).astype(jnp.bfloat16)

        # Fused MeanPooling + (eval) Dropout + Linear in the Pallas kernel.
        out = goodreads_head(last_hidden_state, mask, self.fc_w, self.fc_b,
                             tb=tb, ts=ts)
        return out[:B]


# --------------------------------- Main --------------------------------------

if __name__ == "__main__":
    key = jax.random.PRNGKey(0)
    k_model, k_ids = jax.random.split(key, 2)

    B, S, H, C, V = 2, 8, 32, 4, 100  # batch, seq, hidden, n_classes, vocab

    model = GoodreadsModelPallas(vocab_size=V, hidden_size=H,
                                 n_classes=C, key=k_model)

    ids = jax.random.randint(k_ids, (B, S), 0, V, dtype=jnp.int32)
    # attention mask: first few tokens valid, rest padded (deterministic)
    valid_lens = jnp.array([6, 3], dtype=jnp.int32)
    mask = (jnp.arange(S)[None, :] < valid_lens[:, None]).astype(jnp.int32)

    out = model(ids, mask)
    jax.block_until_ready(out)

    # Reference check in plain JAX (same math: bf16 hidden states, bf16 MXU
    # inputs with f32 accumulation).
    hs = jnp.take(model.embedding, ids, axis=0).astype(
        jnp.bfloat16).astype(jnp.float32)
    m = mask.astype(jnp.float32)[:, :, None]
    ref_pool = jnp.sum(hs * m, axis=1) / jnp.maximum(jnp.sum(m, axis=1), 1e-9)
    ref_out = jnp.dot(ref_pool.astype(jnp.bfloat16),
                      model.fc_w.astype(jnp.bfloat16),
                      preferred_element_type=jnp.float32) + model.fc_b

    assert out.shape == (B, C)
    assert jnp.allclose(out, ref_out, atol=2e-3, rtol=2e-3)

    print("KERNEL_OK")
</pallas_src>

<mosaic_0001>
module attributes {stable_mosaic.version = 11 : i64} {
  func.func @goodreads_head_kernel(%arg0: i32, %arg1: i32, %arg2: memref<1xi32, #tpu.memory_space<smem>>, %arg3: memref<2x8x32xbf16, #tpu.memory_space<vmem>>, %arg4: memref<2x8xf32, #tpu.memory_space<vmem>>, %arg5: memref<32x128xbf16, #tpu.memory_space<vmem>>, %arg6: memref<1x128xf32, #tpu.memory_space<vmem>>, %arg7: memref<2x128xf32, #tpu.memory_space<vmem>>, %arg8: memref<2x32xf32, #tpu.memory_space<vmem>>, %arg9: memref<2x1xf32, #tpu.memory_space<vmem>>) attributes {dimension_semantics = [#tpu.dimension_semantics<parallel>, #tpu.dimension_semantics<arbitrary>], iteration_bounds = array<i64: 1, 1>, scalar_prefetch = 1 : i64, scratch_operands = 2 : i64, tpu.core_type = #tpu.core_type<tc>, window_params = [{transform_indices = @transform_0, window_bounds = array<i64: 2, 8, 32>}, {transform_indices = @transform_1, window_bounds = array<i64: 2, 8>}, {pipeline_mode = #tpu.pipeline_mode<synchronous>, transform_indices = @transform_2, window_bounds = array<i64: 32, 128>}, {pipeline_mode = #tpu.pipeline_mode<synchronous>, transform_indices = @transform_3, window_bounds = array<i64: 1, 128>}, {transform_indices = @transform_4, window_bounds = array<i64: 2, 128>}]} {
    %c0_i32 = arith.constant 0 : i32
    %0 = arith.cmpi eq, %arg1, %c0_i32 : i32
    %1 = arith.extui %0 : i1 to i32
    %c0_i32_0 = arith.constant 0 : i32
    %2 = arith.cmpi ne, %1, %c0_i32_0 : i32
    scf.if %2 {
      %cst = arith.constant 0.000000e+00 : f32
      %11 = vector.broadcast %cst : f32 to vector<2x32xf32>
      %c0 = arith.constant 0 : index
      %c0_4 = arith.constant 0 : index
      %12 = vector.load %arg8[%c0, %c0_4] : memref<2x32xf32, #tpu.memory_space<vmem>>, vector<2x32xf32>
      tpu.vector_store %arg8[%c0, %c0_4], %11 {strides = array<i32>} : memref<2x32xf32, #tpu.memory_space<vmem>>, vector<2x32xf32>,
      %cst_5 = arith.constant 0.000000e+00 : f32
      %13 = vector.broadcast %cst_5 : f32 to vector<2x1xf32>
      %c0_6 = arith.constant 0 : index
      %c0_7 = arith.constant 0 : index
      %14 = vector.load %arg9[%c0_6, %c0_7] : memref<2x1xf32, #tpu.memory_space<vmem>>, vector<2x1xf32>
      tpu.vector_store %arg9[%c0_6, %c0_7], %13 {strides = array<i32>} : memref<2x1xf32, #tpu.memory_space<vmem>>, vector<2x1xf32>,
    } else {
    }
    %3 = arith.index_cast %arg0 : i32 to index
    %4 = memref.load %arg2[%3] : memref<1xi32, #tpu.memory_space<smem>>
    %5 = arith.cmpi slt, %arg1, %4 : i32
    %6 = arith.extui %5 : i1 to i32
    %c0_i32_1 = arith.constant 0 : i32
    %7 = arith.cmpi ne, %6, %c0_i32_1 : i32
    scf.if %7 {
      %c0 = arith.constant 0 : index
      %c0_4 = arith.constant 0 : index
      %c0_5 = arith.constant 0 : index
      %11 = vector.load %arg3[%c0, %c0_4, %c0_5] : memref<2x8x32xbf16, #tpu.memory_space<vmem>>, vector<2x8x32xbf16>
      %c0_6 = arith.constant 0 : index
      %c0_7 = arith.constant 0 : index
      %12 = vector.load %arg4[%c0_6, %c0_7] : memref<2x8xf32, #tpu.memory_space<vmem>>, vector<2x8xf32>
      %13 = arith.truncf %12 : vector<2x8xf32> to vector<2x8xbf16>
      %14 = vector.shape_cast %13 : vector<2x8xbf16> to vector<2x8x1xbf16>
      %15 = vector.broadcast %14 : vector<2x8x1xbf16> to vector<2x8x32xbf16>
      %16 = arith.mulf %11, %15 : vector<2x8x32xbf16>
      %c0_8 = arith.constant 0 : index
      %c0_9 = arith.constant 0 : index
      %17 = vector.load %arg8[%c0_8, %c0_9] : memref<2x32xf32, #tpu.memory_space<vmem>>, vector<2x32xf32>
      %18 = arith.extf %16 : vector<2x8x32xbf16> to vector<2x8x32xf32>
      %cst = arith.constant dense<0.000000e+00> : vector<2x32xf32>
      %19 = vector.multi_reduction <add>, %18, %cst [1] : vector<2x8x32xf32> to vector<2x32xf32>
      %20 = arith.addf %17, %19 : vector<2x32xf32>
      %c0_10 = arith.constant 0 : index
      %c0_11 = arith.constant 0 : index
      %21 = vector.load %arg8[%c0_10, %c0_11] : memref<2x32xf32, #tpu.memory_space<vmem>>, vector<2x32xf32>
      tpu.vector_store %arg8[%c0_10, %c0_11], %20 {strides = array<i32>} : memref<2x32xf32, #tpu.memory_space<vmem>>, vector<2x32xf32>,
      %c0_12 = arith.constant 0 : index
      %c0_13 = arith.constant 0 : index
      %22 = vector.load %arg9[%c0_12, %c0_13] : memref<2x1xf32, #tpu.memory_space<vmem>>, vector<2x1xf32>
      %cst_14 = arith.constant dense<0.000000e+00> : vector<2xf32>
      %23 = vector.multi_reduction <add>, %12, %cst_14 [1] : vector<2x8xf32> to vector<2xf32>
      %24 = vector.shape_cast %23 : vector<2xf32> to vector<2x1xf32>
      %25 = arith.addf %22, %24 : vector<2x1xf32>
      %c0_15 = arith.constant 0 : index
      %c0_16 = arith.constant 0 : index
      %26 = vector.load %arg9[%c0_15, %c0_16] : memref<2x1xf32, #tpu.memory_space<vmem>>, vector<2x1xf32>
      tpu.vector_store %arg9[%c0_15, %c0_16], %25 {strides = array<i32>} : memref<2x1xf32, #tpu.memory_space<vmem>>, vector<2x1xf32>,
    } else {
    }
    %c0_i32_2 = arith.constant 0 : i32
    %8 = arith.cmpi eq, %arg1, %c0_i32_2 : i32
    %9 = arith.extui %8 : i1 to i32
    %c0_i32_3 = arith.constant 0 : i32
    %10 = arith.cmpi ne, %9, %c0_i32_3 : i32
    scf.if %10 {
      %c0 = arith.constant 0 : index
      %c0_4 = arith.constant 0 : index
      %11 = vector.load %arg9[%c0, %c0_4] : memref<2x1xf32, #tpu.memory_space<vmem>>, vector<2x1xf32>
      %cst = arith.constant 9.99999971E-10 : f32
      %12 = vector.broadcast %cst : f32 to vector<2x1xf32>
      %13 = arith.maximumf %11, %12 : vector<2x1xf32>
      %c0_5 = arith.constant 0 : index
      %c0_6 = arith.constant 0 : index
      %14 = vector.load %arg8[%c0_5, %c0_6] : memref<2x32xf32, #tpu.memory_space<vmem>>, vector<2x32xf32>
      %15 = tpu.reciprocal %13 {approx = true} : vector<2x1xf32> -> vector<2x1xf32>
      %16 = vector.broadcast %15 : vector<2x1xf32> to vector<2x32xf32>
      %17 = arith.mulf %14, %16 : vector<2x32xf32>
      %18 = arith.truncf %17 : vector<2x32xf32> to vector<2x32xbf16>
      %c0_7 = arith.constant 0 : index
      %c0_8 = arith.constant 0 : index
      %19 = vector.load %arg5[%c0_7, %c0_8] : memref<32x128xbf16, #tpu.memory_space<vmem>>, vector<32x128xbf16>
      %cst_9 = arith.constant dense<0.000000e+00> : vector<2x128xf32>
      %20 = tpu.matmul %18, %19, %cst_9 {dimension_numbers = #tpu.dot_dimension_numbers<[1], [0], [0], [1], [0, 0, 1, 1], [], []>} : vector<2x32xbf16>, vector<32x128xbf16>, vector<2x128xf32> -> vector<2x128xf32>
      %c0_10 = arith.constant 0 : index
      %c0_11 = arith.constant 0 : index
      %21 = vector.load %arg6[%c0_10, %c0_11] : memref<1x128xf32, #tpu.memory_space<vmem>>, vector<1x128xf32>
      %22 = vector.broadcast %21 : vector<1x128xf32> to vector<2x128xf32>
      %23 = arith.addf %20, %22 : vector<2x128xf32>
      %c0_12 = arith.constant 0 : index
      %c0_13 = arith.constant 0 : index
      %24 = vector.load %arg7[%c0_12, %c0_13] : memref<2x128xf32, #tpu.memory_space<vmem>>, vector<2x128xf32>
      tpu.vector_store %arg7[%c0_12, %c0_13], %23 {strides = array<i32>} : memref<2x128xf32, #tpu.memory_space<vmem>>, vector<2x128xf32>,
    } else {
    }
    return
  }
  func.func @transform_0(%arg0: i32, %arg1: i32, %arg2: memref<1xi32, #tpu.memory_space<smem>>) -> (i32, i32, i32) {
    %0 = arith.index_cast %arg0 : i32 to index
    %1 = memref.load %arg2[%0] : memref<1xi32, #tpu.memory_space<smem>>
    %c1_i32 = arith.constant 1 : i32
    %2 = arith.subi %1, %c1_i32 : i32
    %c0_i32 = arith.constant 0 : i32
    %3 = arith.maxsi %2, %c0_i32 : i32
    %4 = arith.minsi %arg1, %3 : i32
    %c0_i32_0 = arith.constant 0 : i32
    %c0_i32_1 = arith.constant 0 : i32
    return %arg0, %4, %c0_i32_0 : i32, i32, i32
  }
  func.func @transform_1(%arg0: i32, %arg1: i32, %arg2: memref<1xi32, #tpu.memory_space<smem>>) -> (i32, i32) {
    %0 = arith.index_cast %arg0 : i32 to index
    %1 = memref.load %arg2[%0] : memref<1xi32, #tpu.memory_space<smem>>
    %c1_i32 = arith.constant 1 : i32
    %2 = arith.subi %1, %c1_i32 : i32
    %c0_i32 = arith.constant 0 : i32
    %3 = arith.maxsi %2, %c0_i32 : i32
    %4 = arith.minsi %arg1, %3 : i32
    %c0_i32_0 = arith.constant 0 : i32
    return %arg0, %4 : i32, i32
  }
  func.func @transform_2(%arg0: i32, %arg1: i32, %arg2: memref<1xi32, #tpu.memory_space<smem>>) -> (i32, i32) {
    %c0_i32 = arith.constant 0 : i32
    %c0_i32_0 = arith.constant 0 : i32
    %c0_i32_1 = arith.constant 0 : i32
    return %c0_i32, %c0_i32_0 : i32, i32
  }
  func.func @transform_3(%arg0: i32, %arg1: i32, %arg2: memref<1xi32, #tpu.memory_space<smem>>) -> (i32, i32) {
    %c0_i32 = arith.constant 0 : i32
    %c0_i32_0 = arith.constant 0 : i32
    %c0_i32_1 = arith.constant 0 : i32
    return %c0_i32, %c0_i32_0 : i32, i32
  }
  func.func @transform_4(%arg0: i32, %arg1: i32, %arg2: memref<1xi32, #tpu.memory_space<smem>>) -> (i32, i32) {
    %c0_i32 = arith.constant 0 : i32
    %c0_i32_0 = arith.constant 0 : i32
    return %arg0, %c0_i32 : i32, i32
  }
}

</mosaic_0001>

<bundles_post_ra>
// kernel: goodreads_head.1
= control target key start
LH: loop header
LB: loop body
LE: loop exit
PB: predicated region body
PF: predicated region fallthrough
CT: control target
= control target key end

     0   :  { %11 = vsyncpa [#allocation7], 0  ;;  %vm109_vm0 = vcmask 254976   ;;  %vm111_vm1 = vcmask 1024   ;;  %v362_v0 = vmov 0.0   ;;  %s429_s0 = inlined_call_operand.<no memory space> [shape: s32[1], index: 0, kind: input, shape index: {}]   ;;  %s430_s1 = inlined_call_operand.vmem [shape: bf16[2,8,32], index: 1, kind: input, shape index: {}]   ;;  %s431_s2 = inlined_call_operand.vmem [shape: f32[2,8], index: 2, kind: input, shape index: {}]   ;;  %s432_s3 = inlined_call_operand.vmem [shape: bf16[32,128], index: 3, kind: input, shape index: {}]   ;;  %s433_s4 = inlined_call_operand.vmem [shape: f32[1,128], index: 4, kind: input, shape index: {}]   ;;  %s434_s5 = inlined_call_operand.hbm [shape: f32[2,128], index: 5, kind: output, shape index: {}]  }
   0x1   :  { %110 = vst.msk [vmem:[#allocation2] sm:$0x3] %vm109_vm0, %v362_v0  ;;  %p299_p0 = scmp.le.s32.totalorder %s429_s0, 0 }
   0x2   :  { %112 = vst.msk [vmem:[#allocation3] sm:$0x3] %vm111_vm1, %v362_v0 }
   0x3   :  { %117 = sbr.rel (%p299_p0) target bundleno = 156 (0x9c), region = 25 }
   0x8   :  { %v120_v1 = vld [vmem:[%s431_s2] sm:$0x3]  ;;  %vm171_vm2 = vcmask 58368   ;;  %v125_v2 = vlaneseq  ;;  %vm147_vm3 = vcmask 261120   ;;  %v119_v15 = vld [vmem:[%s430_s1 + $0x4] sm:$0xf] }
   0x9   :  { %v172_v3 = vsel %vm171_vm2, %v120_v1, 0.0  ;;  %v121_v4 = vpack.c.bf16 %v120_v1, %v120_v1  ;;  %v118_v12 = vld [vmem:[%s430_s1] sm:$0xf]  ;;  %vm164_vm4 = vcmask 1041409  }
   0xa   :  { %173 = vadd.xlane.f32.xlu1 %v172_v3  ;;  %v126_v5 = vshrl.u32 %v125_v2, 7  ;;  %v170_v29 = vld [vmem:[#allocation3] sm:$0x3]  ;;  %v144_v36 = vld [vmem:[#allocation2] sm:$0x3] }
   0xb   :  { %v132_v6 = vshrl.u32 %v121_v4, 16  ;;  %v123_v7 = vpack.i.b16 %v121_v4, %v121_v4 }
   0xc   :  { %v127_v8 = vsub.s32 0, %v126_v5 }
   0xd   :  { %v133_v9 = vpack.i.b16 %v132_v6, %v132_v6 }
   0xe   :  { %v128_v10 = vrot.slane %v123_v7, %v127_v8 }
   0xf   :  { %v138_v11 = vrot.slane %v133_v9, %v127_v8 }
  0x10   :  { %130 = vbcast.lane.c.b16.xlu0 %v128_v10, 256 }
  0x14   :  { %140 = vbcast.lane.c.b16.xlu0 %v138_v11, 256 }
  0x82   :  { %v131_v13 = vpop.permute.xlu0 %130 }
  0x83   :  { %v142_v14 = vmul.bf16 %v131_v13, %v118_v12 }
  0x85   :  { %v145_v16 = vunpack.c.l.bf16 %v142_v14 }
  0x86   :  { %v141_v17 = vpop.permute.xlu0 %140 }
  0x87   :  { %v148_v18 = vsel %vm147_vm3, %v145_v16, 0.0  ;;  %v143_v19 = vmul.bf16 %v141_v17, %v119_v15 }
  0x88   :  { %v149_v20 = vrot.slane %v148_v18, 4 }
  0x89   :  { %v146_v21 = vunpack.c.l.bf16 %v143_v19 }
  0x8a   :  { %v150_v22 = vadd.f32 %v149_v20, %v148_v18 }
  0x8b   :  { %v155_v23 = vsel %vm147_vm3, %v146_v21, 0.0 }
  0x8c   :  { %v151_v24 = vrot.slane %v150_v22, 2  ;;  %v156_v25 = vrot.slane %v155_v23, 4 }
  0x8e   :  { %v152_v26 = vadd.f32 %v151_v24, %v150_v22  ;;  %v157_v27 = vadd.f32 %v156_v25, %v155_v23 }
  0x90   :  { %v158_v28 = vrot.slane %v157_v27, 2  ;;  %v153_v30 = vrot.slane %v152_v26, 1 }
  0x92   :  { %v159_v31 = vadd.f32 %v158_v28, %v157_v27  ;;  %v154_v35 = vadd.f32 %v153_v30, %v152_v26 }
  0x93   :  { %v174_v32 = vpop.xlane.xlu1 %173 }
  0x94   :  { %v160_v33 = vrot.slane %v159_v31, 1  ;;  %v175_v34 = vadd.f32 %v174_v32, %v170_v29 }
  0x96   :  { %v161_v37 = vadd.f32 %v160_v33, %v159_v31  ;;  %177 = vst.msk [vmem:[#allocation3] sm:$0x3] %vm111_vm1, %v175_v34 }
  0x98   :  { %v165_v38 = vsel %vm164_vm4, %v161_v37, %v154_v35 }
  0x99   :  { %v167_v39 = vadd.f32 %v165_v38, %v144_v36 }
  0x9b   :  { %169 = vst.msk [vmem:[#allocation2] sm:$0x3] %vm109_vm0, %v167_v39 }
  0x9c PF:  { %323 = vmatprep.subr.bf16.mxu0 %v362_v0  ;;  %v336_v41 = vld [vmem:[%s432_s3 + $0x8] sm:$0xff]   ;;  %v363_v42 = vmov 0   ;;  %v337_v44 = vld [vmem:[%s432_s3] sm:$0xff]   ;;  %vm364_vm5 = vmmov 0   ;;  %vm215_vm6 = vcmask 261120   ;;  %s365_s29 = smov [#allocation6]  }
  0x9d   :  { %v181_v40 = vld [vmem:[#allocation3] sm:$0x3]  ;;  %335 = vset.pattern.permute.xlu0 %v363_v42  ;;  %324 = vmatpush3.bf16.msra.mxu0 %v336_v41  ;;  %v300_v50 = vld [vmem:[%s433_s4] ss:$0 sm:$0xff]  ;;  %s266_s30 = sshll.u32 %s365_s29, 4  ;;  %s267_s30 = int_to_ptr.vmem [resolvable:$true] %s266_s30 }
  0x9e   :  { %v182_v43 = vmax.f32 %v181_v40, 1e-09  ;;  %325 = vmatprep.subr.bf16.mxu0 %v362_v0  ;;  %327 = vmatprep.mubr.msk.bf16.mxu0 %vm364_vm5, %v362_v0  ;;  %s340_s3 = scalar_lea.vmem %s267_s30, 32  ;;  %p345_p2 = scmp.lt.s32.totalorder %s267_s30, %s267_s30 }
  0x9f   :  { %p341_p1 = scmp.ne.s32.totalorder %s267_s30, %s340_s3  ;;  %p346_p3 = scmp.lt.s32.totalorder %s340_s3, %s340_s3 }
  0xa0   :  { %338 = vrcp.f32 %v182_v43 }
  0xa1   :  { %326 = vmatpush3.bf16.msra.mxu0 %v337_v44  ;;  %p347_p4 = por %p346_p3, %p345_p2 }
  0xa2   :  { %v183_v46 = vld [vmem:[#allocation2] sm:$0x3] }
  0xa3   :  { %p348_p5 = pnand %p347_p4, %p341_p1 }
  0xad   :  { %v339_v45 = vpop.eup %338 }
  0xae   :  { %187 = vperm.xlu0 %335, %v339_v45  }
 0x129   :  { %v188_v47 = vpop.permute.xlu0 %187 }
 0x12a   :  { %v190_v48 = vmul.f32 %v188_v47, %v183_v46 }
 0x12c   :  { %v191_v49 = vpack.c.bf16 %v190_v48, %v190_v48 }
 0x12e   :  { %328 = vmatmul.mubr.msk.bf16.vlgmr.msra.gmra.mxu0 %vm215_vm6, %v191_v49 }
 0x1ee   :  { %v253_v51 = vpop.f32.mrf.mxu0 }
 0x1ef   :  { %v254_v52 = vadd.f32 %v300_v50, %v253_v51 }
 0x1f0   :  { %v329_v53 = vpop.f32.mrf.mxu0 }
 0x1f1   :  { %259 = vst [vmem:[#allocation6] sm:$0x3] %v254_v52 }
 0x1f2   :  { %v256_v54 = vpop.f32.mrf.mxu0 }
 0x1f3   :  { %351 = shalt.err (!%p348_p5)
}
 0x1f4   :  { %269 = dma.vmem_to_hbm [thread:$0]  %s267_s30, 32, %s434_s5, [#allocation7]   ;;  %v330_v55 = vpop.f32.mrf.mxu0 }
 0x1f5   :  { %360 = dma.done.wait [#allocation7], 32  }
 0x1f6   :  { %361 = vsyncadd [#allocation7], 4294967264 }
 0x1f7   :  { %273 = vsyncpa [#allocation7], 1 }

</bundles_post_ra>
